<compile_context>
chip_gen: v7x
topology: tpu7x:2x2x1
jax: 0.10.0
libtpu: 0.0.40
codegen_flags: <defaults>
</compile_context>

<pallas_src>
import jax
import jax.numpy as jnp
from jax import lax
from jax.experimental import pallas as pl
from jax.experimental.pallas import tpu as pltpu


def gru_kernel(x2d_ref, h0_ref, wx_ref, bx_ref, whzr_ref, whc_ref,
               wf_ref, bf_ref, class_out_ref, hidden_out_ref, xproj_ref):
    B, H = h0_ref.shape
    T = x2d_ref.shape[0] // B

    # Phase 1: hoisted input projection for ALL timesteps in one MXU matmul.
    #   (T*B, E) @ (E, 3H) + (1, 3H); columns [0:H)=update, [H:2H)=reset,
    #   [2H:3H)=candidate, biases already folded in.
    xproj_ref[...] = (
        jnp.dot(x2d_ref[...], wx_ref[...], preferred_element_type=jnp.float32)
        + bx_ref[...])

    whzr = whzr_ref[...]          # (H, 2H) fused update|reset recurrent weights
    whc = whc_ref[...]            # (H, H)  candidate recurrent weights

    # Phase 2: serial recurrence — only h-dependent matmuls remain on the chain.
    def step(t, h):
        base = pl.multiple_of(t * B, B)
        xp = xproj_ref[pl.ds(base, B), :]                       # (B, 3H)
        zr = jax.nn.sigmoid(
            xp[:, :2 * H]
            + jnp.dot(h, whzr, preferred_element_type=jnp.float32))
        z = zr[:, :H]
        r = zr[:, H:]
        c = jnp.tanh(
            xp[:, 2 * H:]
            + jnp.dot(r * h, whc, preferred_element_type=jnp.float32))
        return z * h + (1.0 - z) * c

    h_final = lax.fori_loop(0, T, step, h0_ref[...], unroll=True)

    # Phase 3: fc + softmax(dim=1) on the final hidden state.
    hidden_out_ref[...] = h_final
    logits = (jnp.dot(h_final, wf_ref[...], preferred_element_type=jnp.float32)
              + bf_ref[...])
    m = jnp.max(logits, axis=1, keepdims=True)
    e = jnp.exp(logits - m)
    denom = jnp.sum(e, axis=1, keepdims=True)
    class_out_ref[...] = e * pl.reciprocal(denom, approx=True)


def gru_forward(x, hidden, params):
    T, B, E = x.shape
    H = hidden.shape[1]
    O = params["wf"].shape[1]

    # One-time weight packing (outside the serial recurrence).
    wx = jnp.concatenate([params["wz_x"], params["wr_x"], params["wc_x"]], axis=1)  # (E, 3H)
    bx = jnp.concatenate([params["bz"], params["br"], params["bc"]], axis=1)        # (1, 3H)
    whzr = jnp.concatenate([params["wz_h"], params["wr_h"]], axis=1)                # (H, 2H)
    whc = params["wc_h"]                                                            # (H, H)

    # Time-major flatten: row t*B + b == x[t, b, :].
    x2d = x.reshape(T * B, E)

    vmem = pl.BlockSpec(memory_space=pltpu.MemorySpace.VMEM)

    class_out, hidden_out = pl.pallas_call(
        gru_kernel,
        out_shape=(jax.ShapeDtypeStruct((B, O), jnp.float32),
                   jax.ShapeDtypeStruct((B, H), jnp.float32)),
        in_specs=[vmem] * 8,
        out_specs=(vmem, vmem),
        scratch_shapes=[pltpu.VMEM((T * B, 3 * H), jnp.float32)],
    )(x2d, hidden, wx, bx, whzr, whc, params["wf"], params["bf"])
    return class_out, hidden_out


def init_params(key, input_size, hidden_size, output_size):
    """Deterministic init matching the module's initialize_weights():
    xavier_uniform for gru_* weights, xavier_normal for fc weight, zero biases."""
    ks = jax.random.split(key, 4)
    fan_in = input_size + hidden_size
    fan_out = hidden_size

    def xavier_uniform(k, shape):  # shape = (in, out) [already transposed]
        bound = jnp.sqrt(6.0 / (fan_in + fan_out))
        return jax.random.uniform(k, shape, jnp.float32, -bound, bound)

    wz = xavier_uniform(ks[0], (fan_in, hidden_size))
    wr = xavier_uniform(ks[1], (fan_in, hidden_size))
    wc = xavier_uniform(ks[2], (fan_in, hidden_size))

    std_fc = jnp.sqrt(2.0 / (hidden_size + output_size))
    wf = std_fc * jax.random.normal(ks[3], (hidden_size, output_size), jnp.float32)

    params = dict(
        wz_x=wz[:input_size], wz_h=wz[input_size:],
        bz=jnp.zeros((1, hidden_size), jnp.float32),
        wr_x=wr[:input_size], wr_h=wr[input_size:],
        br=jnp.zeros((1, hidden_size), jnp.float32),
        wc_x=wc[:input_size], wc_h=wc[input_size:],
        bc=jnp.zeros((1, hidden_size), jnp.float32),
        wf=wf,
        bf=jnp.zeros((1, output_size), jnp.float32),
    )
    return params


def gru_reference(x, hidden, params):
    """Pure-JAX reference mirroring the PyTorch forward."""
    seq_len = x.shape[0]
    for i in range(seq_len):
        x_t = x[i]
        z = jax.nn.sigmoid(x_t @ params["wz_x"] + hidden @ params["wz_h"] + params["bz"])
        r = jax.nn.sigmoid(x_t @ params["wr_x"] + hidden @ params["wr_h"] + params["br"])
        c = jnp.tanh(x_t @ params["wc_x"] + (r * hidden) @ params["wc_h"] + params["bc"])
        hidden = z * hidden + (1.0 - z) * c
    logits = hidden @ params["wf"] + params["bf"]
    return jax.nn.softmax(logits, axis=1), hidden


if __name__ == "__main__":
    # batch=8 keeps the (B, *) tiles sublane-dense for f32.
    seq_len, batch, input_size, hidden_size, output_size = 8, 8, 16, 32, 8

    key = jax.random.PRNGKey(0)
    k_x, k_p = jax.random.split(key)

    x = jax.random.normal(k_x, (seq_len, batch, input_size), jnp.float32)
    hidden0 = jnp.zeros((batch, hidden_size), jnp.float32)   # init_hidden
    params = init_params(k_p, input_size, hidden_size, output_size)

    class_out, hidden_out = gru_forward(x, hidden0, params)
    jax.block_until_ready(class_out)
    jax.block_until_ready(hidden_out)

    ref_class, ref_hidden = gru_reference(x, hidden0, params)
    # hidden is exact-f32 parity; class_out tolerance loosened for the
    # approximate EUP reciprocal in the softmax denominator.
    assert jnp.allclose(hidden_out, ref_hidden, atol=1e-5, rtol=1e-5)
    assert jnp.allclose(class_out, ref_class, atol=2e-3, rtol=2e-3)
    assert class_out.shape == (batch, output_size)
    assert hidden_out.shape == (batch, hidden_size)

    print("KERNEL_OK")
</pallas_src>

<mosaic_0001>
module attributes {stable_mosaic.version = 11 : i64} {
  func.func @gru_kernel(%arg0: memref<64x16xf32, #tpu.memory_space<vmem>>, %arg1: memref<8x32xf32, #tpu.memory_space<vmem>>, %arg2: memref<16x96xf32, #tpu.memory_space<vmem>>, %arg3: memref<1x96xf32, #tpu.memory_space<vmem>>, %arg4: memref<32x64xf32, #tpu.memory_space<vmem>>, %arg5: memref<32x32xf32, #tpu.memory_space<vmem>>, %arg6: memref<32x8xf32, #tpu.memory_space<vmem>>, %arg7: memref<1x8xf32, #tpu.memory_space<vmem>>, %arg8: memref<8x8xf32, #tpu.memory_space<vmem>>, %arg9: memref<8x32xf32, #tpu.memory_space<vmem>>, %arg10: memref<64x96xf32, #tpu.memory_space<vmem>>) attributes {dimension_semantics = [], scalar_prefetch = 0 : i64, scratch_operands = 1 : i64, tpu.core_type = #tpu.core_type<tc>} {
    %c0 = arith.constant 0 : index
    %c0_0 = arith.constant 0 : index
    %0 = vector.load %arg0[%c0, %c0_0] : memref<64x16xf32, #tpu.memory_space<vmem>>, vector<64x16xf32>
    %c0_1 = arith.constant 0 : index
    %c0_2 = arith.constant 0 : index
    %1 = vector.load %arg2[%c0_1, %c0_2] : memref<16x96xf32, #tpu.memory_space<vmem>>, vector<16x96xf32>
    %cst = arith.constant dense<0.000000e+00> : vector<64x96xf32>
    %2 = tpu.matmul %0, %1, %cst {dimension_numbers = #tpu.dot_dimension_numbers<[1], [0], [0], [1], [0, 0, 1, 1], [], []>} : vector<64x16xf32>, vector<16x96xf32>, vector<64x96xf32> -> vector<64x96xf32>
    %c0_3 = arith.constant 0 : index
    %c0_4 = arith.constant 0 : index
    %3 = vector.load %arg3[%c0_3, %c0_4] : memref<1x96xf32, #tpu.memory_space<vmem>>, vector<1x96xf32>
    %4 = vector.broadcast %3 : vector<1x96xf32> to vector<64x96xf32>
    %5 = arith.addf %2, %4 : vector<64x96xf32>
    %c0_5 = arith.constant 0 : index
    %c0_6 = arith.constant 0 : index
    %6 = vector.load %arg10[%c0_5, %c0_6] : memref<64x96xf32, #tpu.memory_space<vmem>>, vector<64x96xf32>
    tpu.vector_store %arg10[%c0_5, %c0_6], %5 {strides = array<i32>} : memref<64x96xf32, #tpu.memory_space<vmem>>, vector<64x96xf32>,
    %c0_7 = arith.constant 0 : index
    %c0_8 = arith.constant 0 : index
    %7 = vector.load %arg4[%c0_7, %c0_8] : memref<32x64xf32, #tpu.memory_space<vmem>>, vector<32x64xf32>
    %c0_9 = arith.constant 0 : index
    %c0_10 = arith.constant 0 : index
    %8 = vector.load %arg5[%c0_9, %c0_10] : memref<32x32xf32, #tpu.memory_space<vmem>>, vector<32x32xf32>
    %c0_11 = arith.constant 0 : index
    %c0_12 = arith.constant 0 : index
    %9 = vector.load %arg1[%c0_11, %c0_12] : memref<8x32xf32, #tpu.memory_space<vmem>>, vector<8x32xf32>
    %c0_i32 = arith.constant 0 : i32
    %c8_i32 = arith.constant 8 : i32
    %10 = arith.muli %c0_i32, %c8_i32 : i32
    %11 = tpu.assume_multiple %10, 8 : i32
    %12 = arith.index_cast %11 : i32 to index
    %c0_13 = arith.constant 0 : index
    %13 = vector.load %arg10[%12, %c0_13] : memref<64x96xf32, #tpu.memory_space<vmem>>, vector<8x96xf32>
    %14 = vector.extract_strided_slice %13 {offsets = [0, 0], sizes = [8, 64], strides = [1, 1]} : vector<8x96xf32> to vector<8x64xf32>
    %cst_14 = arith.constant dense<0.000000e+00> : vector<8x64xf32>
    %15 = tpu.matmul %9, %7, %cst_14 {dimension_numbers = #tpu.dot_dimension_numbers<[1], [0], [0], [1], [0, 0, 1, 1], [], []>} : vector<8x32xf32>, vector<32x64xf32>, vector<8x64xf32> -> vector<8x64xf32>
    %16 = arith.addf %14, %15 : vector<8x64xf32>
    %17 = arith.negf %16 : vector<8x64xf32>
    %18 = math.exp %17 : vector<8x64xf32>
    %cst_15 = arith.constant 1.000000e+00 : f32
    %19 = vector.broadcast %cst_15 : f32 to vector<8x64xf32>
    %20 = arith.addf %19, %18 : vector<8x64xf32>
    %21 = arith.divf %19, %20 : vector<8x64xf32>
    %22 = vector.extract_strided_slice %21 {offsets = [0, 0], sizes = [8, 32], strides = [1, 1]} : vector<8x64xf32> to vector<8x32xf32>
    %23 = vector.extract_strided_slice %21 {offsets = [0, 32], sizes = [8, 32], strides = [1, 1]} : vector<8x64xf32> to vector<8x32xf32>
    %24 = vector.extract_strided_slice %13 {offsets = [0, 64], sizes = [8, 32], strides = [1, 1]} : vector<8x96xf32> to vector<8x32xf32>
    %25 = arith.mulf %23, %9 : vector<8x32xf32>
    %cst_16 = arith.constant dense<0.000000e+00> : vector<8x32xf32>
    %26 = tpu.matmul %25, %8, %cst_16 {dimension_numbers = #tpu.dot_dimension_numbers<[1], [0], [0], [1], [0, 0, 1, 1], [], []>} : vector<8x32xf32>, vector<32x32xf32>, vector<8x32xf32> -> vector<8x32xf32>
    %27 = arith.addf %24, %26 : vector<8x32xf32>
    %28 = math.tanh %27 : vector<8x32xf32>
    %29 = arith.mulf %22, %9 : vector<8x32xf32>
    %cst_17 = arith.constant 1.000000e+00 : f32
    %30 = vector.broadcast %cst_17 : f32 to vector<8x32xf32>
    %31 = arith.subf %30, %22 : vector<8x32xf32>
    %32 = arith.mulf %31, %28 : vector<8x32xf32>
    %33 = arith.addf %29, %32 : vector<8x32xf32>
    %c1_i32 = arith.constant 1 : i32
    %c8_i32_18 = arith.constant 8 : i32
    %34 = arith.muli %c1_i32, %c8_i32_18 : i32
    %35 = tpu.assume_multiple %34, 8 : i32
    %36 = arith.index_cast %35 : i32 to index
    %c0_19 = arith.constant 0 : index
    %37 = vector.load %arg10[%36, %c0_19] : memref<64x96xf32, #tpu.memory_space<vmem>>, vector<8x96xf32>
    %38 = vector.extract_strided_slice %37 {offsets = [0, 0], sizes = [8, 64], strides = [1, 1]} : vector<8x96xf32> to vector<8x64xf32>
    %cst_20 = arith.constant dense<0.000000e+00> : vector<8x64xf32>
    %39 = tpu.matmul %33, %7, %cst_20 {dimension_numbers = #tpu.dot_dimension_numbers<[1], [0], [0], [1], [0, 0, 1, 1], [], []>} : vector<8x32xf32>, vector<32x64xf32>, vector<8x64xf32> -> vector<8x64xf32>
    %40 = arith.addf %38, %39 : vector<8x64xf32>
    %41 = arith.negf %40 : vector<8x64xf32>
    %42 = math.exp %41 : vector<8x64xf32>
    %cst_21 = arith.constant 1.000000e+00 : f32
    %43 = vector.broadcast %cst_21 : f32 to vector<8x64xf32>
    %44 = arith.addf %43, %42 : vector<8x64xf32>
    %45 = arith.divf %43, %44 : vector<8x64xf32>
    %46 = vector.extract_strided_slice %45 {offsets = [0, 0], sizes = [8, 32], strides = [1, 1]} : vector<8x64xf32> to vector<8x32xf32>
    %47 = vector.extract_strided_slice %45 {offsets = [0, 32], sizes = [8, 32], strides = [1, 1]} : vector<8x64xf32> to vector<8x32xf32>
    %48 = vector.extract_strided_slice %37 {offsets = [0, 64], sizes = [8, 32], strides = [1, 1]} : vector<8x96xf32> to vector<8x32xf32>
    %49 = arith.mulf %47, %33 : vector<8x32xf32>
    %cst_22 = arith.constant dense<0.000000e+00> : vector<8x32xf32>
    %50 = tpu.matmul %49, %8, %cst_22 {dimension_numbers = #tpu.dot_dimension_numbers<[1], [0], [0], [1], [0, 0, 1, 1], [], []>} : vector<8x32xf32>, vector<32x32xf32>, vector<8x32xf32> -> vector<8x32xf32>
    %51 = arith.addf %48, %50 : vector<8x32xf32>
    %52 = math.tanh %51 : vector<8x32xf32>
    %53 = arith.mulf %46, %33 : vector<8x32xf32>
    %cst_23 = arith.constant 1.000000e+00 : f32
    %54 = vector.broadcast %cst_23 : f32 to vector<8x32xf32>
    %55 = arith.subf %54, %46 : vector<8x32xf32>
    %56 = arith.mulf %55, %52 : vector<8x32xf32>
    %57 = arith.addf %53, %56 : vector<8x32xf32>
    %c2_i32 = arith.constant 2 : i32
    %c8_i32_24 = arith.constant 8 : i32
    %58 = arith.muli %c2_i32, %c8_i32_24 : i32
    %59 = tpu.assume_multiple %58, 8 : i32
    %60 = arith.index_cast %59 : i32 to index
    %c0_25 = arith.constant 0 : index
    %61 = vector.load %arg10[%60, %c0_25] : memref<64x96xf32, #tpu.memory_space<vmem>>, vector<8x96xf32>
    %62 = vector.extract_strided_slice %61 {offsets = [0, 0], sizes = [8, 64], strides = [1, 1]} : vector<8x96xf32> to vector<8x64xf32>
    %cst_26 = arith.constant dense<0.000000e+00> : vector<8x64xf32>
    %63 = tpu.matmul %57, %7, %cst_26 {dimension_numbers = #tpu.dot_dimension_numbers<[1], [0], [0], [1], [0, 0, 1, 1], [], []>} : vector<8x32xf32>, vector<32x64xf32>, vector<8x64xf32> -> vector<8x64xf32>
    %64 = arith.addf %62, %63 : vector<8x64xf32>
    %65 = arith.negf %64 : vector<8x64xf32>
    %66 = math.exp %65 : vector<8x64xf32>
    %cst_27 = arith.constant 1.000000e+00 : f32
    %67 = vector.broadcast %cst_27 : f32 to vector<8x64xf32>
    %68 = arith.addf %67, %66 : vector<8x64xf32>
    %69 = arith.divf %67, %68 : vector<8x64xf32>
    %70 = vector.extract_strided_slice %69 {offsets = [0, 0], sizes = [8, 32], strides = [1, 1]} : vector<8x64xf32> to vector<8x32xf32>
    %71 = vector.extract_strided_slice %69 {offsets = [0, 32], sizes = [8, 32], strides = [1, 1]} : vector<8x64xf32> to vector<8x32xf32>
    %72 = vector.extract_strided_slice %61 {offsets = [0, 64], sizes = [8, 32], strides = [1, 1]} : vector<8x96xf32> to vector<8x32xf32>
    %73 = arith.mulf %71, %57 : vector<8x32xf32>
    %cst_28 = arith.constant dense<0.000000e+00> : vector<8x32xf32>
    %74 = tpu.matmul %73, %8, %cst_28 {dimension_numbers = #tpu.dot_dimension_numbers<[1], [0], [0], [1], [0, 0, 1, 1], [], []>} : vector<8x32xf32>, vector<32x32xf32>, vector<8x32xf32> -> vector<8x32xf32>
    %75 = arith.addf %72, %74 : vector<8x32xf32>
    %76 = math.tanh %75 : vector<8x32xf32>
    %77 = arith.mulf %70, %57 : vector<8x32xf32>
    %cst_29 = arith.constant 1.000000e+00 : f32
    %78 = vector.broadcast %cst_29 : f32 to vector<8x32xf32>
    %79 = arith.subf %78, %70 : vector<8x32xf32>
    %80 = arith.mulf %79, %76 : vector<8x32xf32>
    %81 = arith.addf %77, %80 : vector<8x32xf32>
    %c3_i32 = arith.constant 3 : i32
    %c8_i32_30 = arith.constant 8 : i32
    %82 = arith.muli %c3_i32, %c8_i32_30 : i32
    %83 = tpu.assume_multiple %82, 8 : i32
    %84 = arith.index_cast %83 : i32 to index
    %c0_31 = arith.constant 0 : index
    %85 = vector.load %arg10[%84, %c0_31] : memref<64x96xf32, #tpu.memory_space<vmem>>, vector<8x96xf32>
    %86 = vector.extract_strided_slice %85 {offsets = [0, 0], sizes = [8, 64], strides = [1, 1]} : vector<8x96xf32> to vector<8x64xf32>
    %cst_32 = arith.constant dense<0.000000e+00> : vector<8x64xf32>
    %87 = tpu.matmul %81, %7, %cst_32 {dimension_numbers = #tpu.dot_dimension_numbers<[1], [0], [0], [1], [0, 0, 1, 1], [], []>} : vector<8x32xf32>, vector<32x64xf32>, vector<8x64xf32> -> vector<8x64xf32>
    %88 = arith.addf %86, %87 : vector<8x64xf32>
    %89 = arith.negf %88 : vector<8x64xf32>
    %90 = math.exp %89 : vector<8x64xf32>
    %cst_33 = arith.constant 1.000000e+00 : f32
    %91 = vector.broadcast %cst_33 : f32 to vector<8x64xf32>
    %92 = arith.addf %91, %90 : vector<8x64xf32>
    %93 = arith.divf %91, %92 : vector<8x64xf32>
    %94 = vector.extract_strided_slice %93 {offsets = [0, 0], sizes = [8, 32], strides = [1, 1]} : vector<8x64xf32> to vector<8x32xf32>
    %95 = vector.extract_strided_slice %93 {offsets = [0, 32], sizes = [8, 32], strides = [1, 1]} : vector<8x64xf32> to vector<8x32xf32>
    %96 = vector.extract_strided_slice %85 {offsets = [0, 64], sizes = [8, 32], strides = [1, 1]} : vector<8x96xf32> to vector<8x32xf32>
    %97 = arith.mulf %95, %81 : vector<8x32xf32>
    %cst_34 = arith.constant dense<0.000000e+00> : vector<8x32xf32>
    %98 = tpu.matmul %97, %8, %cst_34 {dimension_numbers = #tpu.dot_dimension_numbers<[1], [0], [0], [1], [0, 0, 1, 1], [], []>} : vector<8x32xf32>, vector<32x32xf32>, vector<8x32xf32> -> vector<8x32xf32>
    %99 = arith.addf %96, %98 : vector<8x32xf32>
    %100 = math.tanh %99 : vector<8x32xf32>
    %101 = arith.mulf %94, %81 : vector<8x32xf32>
    %cst_35 = arith.constant 1.000000e+00 : f32
    %102 = vector.broadcast %cst_35 : f32 to vector<8x32xf32>
    %103 = arith.subf %102, %94 : vector<8x32xf32>
    %104 = arith.mulf %103, %100 : vector<8x32xf32>
    %105 = arith.addf %101, %104 : vector<8x32xf32>
    %c4_i32 = arith.constant 4 : i32
    %c8_i32_36 = arith.constant 8 : i32
    %106 = arith.muli %c4_i32, %c8_i32_36 : i32
    %107 = tpu.assume_multiple %106, 8 : i32
    %108 = arith.index_cast %107 : i32 to index
    %c0_37 = arith.constant 0 : index
    %109 = vector.load %arg10[%108, %c0_37] : memref<64x96xf32, #tpu.memory_space<vmem>>, vector<8x96xf32>
    %110 = vector.extract_strided_slice %109 {offsets = [0, 0], sizes = [8, 64], strides = [1, 1]} : vector<8x96xf32> to vector<8x64xf32>
    %cst_38 = arith.constant dense<0.000000e+00> : vector<8x64xf32>
    %111 = tpu.matmul %105, %7, %cst_38 {dimension_numbers = #tpu.dot_dimension_numbers<[1], [0], [0], [1], [0, 0, 1, 1], [], []>} : vector<8x32xf32>, vector<32x64xf32>, vector<8x64xf32> -> vector<8x64xf32>
    %112 = arith.addf %110, %111 : vector<8x64xf32>
    %113 = arith.negf %112 : vector<8x64xf32>
    %114 = math.exp %113 : vector<8x64xf32>
    %cst_39 = arith.constant 1.000000e+00 : f32
    %115 = vector.broadcast %cst_39 : f32 to vector<8x64xf32>
    %116 = arith.addf %115, %114 : vector<8x64xf32>
    %117 = arith.divf %115, %116 : vector<8x64xf32>
    %118 = vector.extract_strided_slice %117 {offsets = [0, 0], sizes = [8, 32], strides = [1, 1]} : vector<8x64xf32> to vector<8x32xf32>
    %119 = vector.extract_strided_slice %117 {offsets = [0, 32], sizes = [8, 32], strides = [1, 1]} : vector<8x64xf32> to vector<8x32xf32>
    %120 = vector.extract_strided_slice %109 {offsets = [0, 64], sizes = [8, 32], strides = [1, 1]} : vector<8x96xf32> to vector<8x32xf32>
    %121 = arith.mulf %119, %105 : vector<8x32xf32>
    %cst_40 = arith.constant dense<0.000000e+00> : vector<8x32xf32>
    %122 = tpu.matmul %121, %8, %cst_40 {dimension_numbers = #tpu.dot_dimension_numbers<[1], [0], [0], [1], [0, 0, 1, 1], [], []>} : vector<8x32xf32>, vector<32x32xf32>, vector<8x32xf32> -> vector<8x32xf32>
    %123 = arith.addf %120, %122 : vector<8x32xf32>
    %124 = math.tanh %123 : vector<8x32xf32>
    %125 = arith.mulf %118, %105 : vector<8x32xf32>
    %cst_41 = arith.constant 1.000000e+00 : f32
    %126 = vector.broadcast %cst_41 : f32 to vector<8x32xf32>
    %127 = arith.subf %126, %118 : vector<8x32xf32>
    %128 = arith.mulf %127, %124 : vector<8x32xf32>
    %129 = arith.addf %125, %128 : vector<8x32xf32>
    %c5_i32 = arith.constant 5 : i32
    %c8_i32_42 = arith.constant 8 : i32
    %130 = arith.muli %c5_i32, %c8_i32_42 : i32
    %131 = tpu.assume_multiple %130, 8 : i32
    %132 = arith.index_cast %131 : i32 to index
    %c0_43 = arith.constant 0 : index
    %133 = vector.load %arg10[%132, %c0_43] : memref<64x96xf32, #tpu.memory_space<vmem>>, vector<8x96xf32>
    %134 = vector.extract_strided_slice %133 {offsets = [0, 0], sizes = [8, 64], strides = [1, 1]} : vector<8x96xf32> to vector<8x64xf32>
    %cst_44 = arith.constant dense<0.000000e+00> : vector<8x64xf32>
    %135 = tpu.matmul %129, %7, %cst_44 {dimension_numbers = #tpu.dot_dimension_numbers<[1], [0], [0], [1], [0, 0, 1, 1], [], []>} : vector<8x32xf32>, vector<32x64xf32>, vector<8x64xf32> -> vector<8x64xf32>
    %136 = arith.addf %134, %135 : vector<8x64xf32>
    %137 = arith.negf %136 : vector<8x64xf32>
    %138 = math.exp %137 : vector<8x64xf32>
    %cst_45 = arith.constant 1.000000e+00 : f32
    %139 = vector.broadcast %cst_45 : f32 to vector<8x64xf32>
    %140 = arith.addf %139, %138 : vector<8x64xf32>
    %141 = arith.divf %139, %140 : vector<8x64xf32>
    %142 = vector.extract_strided_slice %141 {offsets = [0, 0], sizes = [8, 32], strides = [1, 1]} : vector<8x64xf32> to vector<8x32xf32>
    %143 = vector.extract_strided_slice %141 {offsets = [0, 32], sizes = [8, 32], strides = [1, 1]} : vector<8x64xf32> to vector<8x32xf32>
    %144 = vector.extract_strided_slice %133 {offsets = [0, 64], sizes = [8, 32], strides = [1, 1]} : vector<8x96xf32> to vector<8x32xf32>
    %145 = arith.mulf %143, %129 : vector<8x32xf32>
    %cst_46 = arith.constant dense<0.000000e+00> : vector<8x32xf32>
    %146 = tpu.matmul %145, %8, %cst_46 {dimension_numbers = #tpu.dot_dimension_numbers<[1], [0], [0], [1], [0, 0, 1, 1], [], []>} : vector<8x32xf32>, vector<32x32xf32>, vector<8x32xf32> -> vector<8x32xf32>
    %147 = arith.addf %144, %146 : vector<8x32xf32>
    %148 = math.tanh %147 : vector<8x32xf32>
    %149 = arith.mulf %142, %129 : vector<8x32xf32>
    %cst_47 = arith.constant 1.000000e+00 : f32
    %150 = vector.broadcast %cst_47 : f32 to vector<8x32xf32>
    %151 = arith.subf %150, %142 : vector<8x32xf32>
    %152 = arith.mulf %151, %148 : vector<8x32xf32>
    %153 = arith.addf %149, %152 : vector<8x32xf32>
    %c6_i32 = arith.constant 6 : i32
    %c8_i32_48 = arith.constant 8 : i32
    %154 = arith.muli %c6_i32, %c8_i32_48 : i32
    %155 = tpu.assume_multiple %154, 8 : i32
    %156 = arith.index_cast %155 : i32 to index
    %c0_49 = arith.constant 0 : index
    %157 = vector.load %arg10[%156, %c0_49] : memref<64x96xf32, #tpu.memory_space<vmem>>, vector<8x96xf32>
    %158 = vector.extract_strided_slice %157 {offsets = [0, 0], sizes = [8, 64], strides = [1, 1]} : vector<8x96xf32> to vector<8x64xf32>
    %cst_50 = arith.constant dense<0.000000e+00> : vector<8x64xf32>
    %159 = tpu.matmul %153, %7, %cst_50 {dimension_numbers = #tpu.dot_dimension_numbers<[1], [0], [0], [1], [0, 0, 1, 1], [], []>} : vector<8x32xf32>, vector<32x64xf32>, vector<8x64xf32> -> vector<8x64xf32>
    %160 = arith.addf %158, %159 : vector<8x64xf32>
    %161 = arith.negf %160 : vector<8x64xf32>
    %162 = math.exp %161 : vector<8x64xf32>
    %cst_51 = arith.constant 1.000000e+00 : f32
    %163 = vector.broadcast %cst_51 : f32 to vector<8x64xf32>
    %164 = arith.addf %163, %162 : vector<8x64xf32>
    %165 = arith.divf %163, %164 : vector<8x64xf32>
    %166 = vector.extract_strided_slice %165 {offsets = [0, 0], sizes = [8, 32], strides = [1, 1]} : vector<8x64xf32> to vector<8x32xf32>
    %167 = vector.extract_strided_slice %165 {offsets = [0, 32], sizes = [8, 32], strides = [1, 1]} : vector<8x64xf32> to vector<8x32xf32>
    %168 = vector.extract_strided_slice %157 {offsets = [0, 64], sizes = [8, 32], strides = [1, 1]} : vector<8x96xf32> to vector<8x32xf32>
    %169 = arith.mulf %167, %153 : vector<8x32xf32>
    %cst_52 = arith.constant dense<0.000000e+00> : vector<8x32xf32>
    %170 = tpu.matmul %169, %8, %cst_52 {dimension_numbers = #tpu.dot_dimension_numbers<[1], [0], [0], [1], [0, 0, 1, 1], [], []>} : vector<8x32xf32>, vector<32x32xf32>, vector<8x32xf32> -> vector<8x32xf32>
    %171 = arith.addf %168, %170 : vector<8x32xf32>
    %172 = math.tanh %171 : vector<8x32xf32>
    %173 = arith.mulf %166, %153 : vector<8x32xf32>
    %cst_53 = arith.constant 1.000000e+00 : f32
    %174 = vector.broadcast %cst_53 : f32 to vector<8x32xf32>
    %175 = arith.subf %174, %166 : vector<8x32xf32>
    %176 = arith.mulf %175, %172 : vector<8x32xf32>
    %177 = arith.addf %173, %176 : vector<8x32xf32>
    %c7_i32 = arith.constant 7 : i32
    %c8_i32_54 = arith.constant 8 : i32
    %178 = arith.muli %c7_i32, %c8_i32_54 : i32
    %179 = tpu.assume_multiple %178, 8 : i32
    %180 = arith.index_cast %179 : i32 to index
    %c0_55 = arith.constant 0 : index
    %181 = vector.load %arg10[%180, %c0_55] : memref<64x96xf32, #tpu.memory_space<vmem>>, vector<8x96xf32>
    %182 = vector.extract_strided_slice %181 {offsets = [0, 0], sizes = [8, 64], strides = [1, 1]} : vector<8x96xf32> to vector<8x64xf32>
    %cst_56 = arith.constant dense<0.000000e+00> : vector<8x64xf32>
    %183 = tpu.matmul %177, %7, %cst_56 {dimension_numbers = #tpu.dot_dimension_numbers<[1], [0], [0], [1], [0, 0, 1, 1], [], []>} : vector<8x32xf32>, vector<32x64xf32>, vector<8x64xf32> -> vector<8x64xf32>
    %184 = arith.addf %182, %183 : vector<8x64xf32>
    %185 = arith.negf %184 : vector<8x64xf32>
    %186 = math.exp %185 : vector<8x64xf32>
    %cst_57 = arith.constant 1.000000e+00 : f32
    %187 = vector.broadcast %cst_57 : f32 to vector<8x64xf32>
    %188 = arith.addf %187, %186 : vector<8x64xf32>
    %189 = arith.divf %187, %188 : vector<8x64xf32>
    %190 = vector.extract_strided_slice %189 {offsets = [0, 0], sizes = [8, 32], strides = [1, 1]} : vector<8x64xf32> to vector<8x32xf32>
    %191 = vector.extract_strided_slice %189 {offsets = [0, 32], sizes = [8, 32], strides = [1, 1]} : vector<8x64xf32> to vector<8x32xf32>
    %192 = vector.extract_strided_slice %181 {offsets = [0, 64], sizes = [8, 32], strides = [1, 1]} : vector<8x96xf32> to vector<8x32xf32>
    %193 = arith.mulf %191, %177 : vector<8x32xf32>
    %cst_58 = arith.constant dense<0.000000e+00> : vector<8x32xf32>
    %194 = tpu.matmul %193, %8, %cst_58 {dimension_numbers = #tpu.dot_dimension_numbers<[1], [0], [0], [1], [0, 0, 1, 1], [], []>} : vector<8x32xf32>, vector<32x32xf32>, vector<8x32xf32> -> vector<8x32xf32>
    %195 = arith.addf %192, %194 : vector<8x32xf32>
    %196 = math.tanh %195 : vector<8x32xf32>
    %197 = arith.mulf %190, %177 : vector<8x32xf32>
    %cst_59 = arith.constant 1.000000e+00 : f32
    %198 = vector.broadcast %cst_59 : f32 to vector<8x32xf32>
    %199 = arith.subf %198, %190 : vector<8x32xf32>
    %200 = arith.mulf %199, %196 : vector<8x32xf32>
    %201 = arith.addf %197, %200 : vector<8x32xf32>
    %c8_i32_60 = arith.constant 8 : i32
    %c0_61 = arith.constant 0 : index
    %c0_62 = arith.constant 0 : index
    %202 = vector.load %arg9[%c0_61, %c0_62] : memref<8x32xf32, #tpu.memory_space<vmem>>, vector<8x32xf32>
    tpu.vector_store %arg9[%c0_61, %c0_62], %201 {strides = array<i32>} : memref<8x32xf32, #tpu.memory_space<vmem>>, vector<8x32xf32>,
    %c0_63 = arith.constant 0 : index
    %c0_64 = arith.constant 0 : index
    %203 = vector.load %arg6[%c0_63, %c0_64] : memref<32x8xf32, #tpu.memory_space<vmem>>, vector<32x8xf32>
    %cst_65 = arith.constant dense<0.000000e+00> : vector<8x8xf32>
    %204 = tpu.matmul %201, %203, %cst_65 {dimension_numbers = #tpu.dot_dimension_numbers<[1], [0], [0], [1], [0, 0, 1, 1], [], []>} : vector<8x32xf32>, vector<32x8xf32>, vector<8x8xf32> -> vector<8x8xf32>
    %c0_66 = arith.constant 0 : index
    %c0_67 = arith.constant 0 : index
    %205 = vector.load %arg7[%c0_66, %c0_67] : memref<1x8xf32, #tpu.memory_space<vmem>>, vector<1x8xf32>
    %206 = vector.broadcast %205 : vector<1x8xf32> to vector<8x8xf32>
    %207 = arith.addf %204, %206 : vector<8x8xf32>
    %cst_68 = arith.constant dense<0xFF800000> : vector<8xf32>
    %208 = vector.multi_reduction <maximumf>, %207, %cst_68 [1] : vector<8x8xf32> to vector<8xf32>
    %209 = vector.shape_cast %208 : vector<8xf32> to vector<8x1xf32>
    %210 = vector.broadcast %209 : vector<8x1xf32> to vector<8x8xf32>
    %211 = arith.subf %207, %210 : vector<8x8xf32>
    %212 = math.exp %211 : vector<8x8xf32>
    %cst_69 = arith.constant dense<0.000000e+00> : vector<8xf32>
    %213 = vector.multi_reduction <add>, %212, %cst_69 [1] : vector<8x8xf32> to vector<8xf32>
    %214 = vector.shape_cast %213 : vector<8xf32> to vector<8x1xf32>
    %215 = tpu.reciprocal %214 {approx = true} : vector<8x1xf32> -> vector<8x1xf32>
    %216 = vector.broadcast %215 : vector<8x1xf32> to vector<8x8xf32>
    %217 = arith.mulf %212, %216 : vector<8x8xf32>
    %c0_70 = arith.constant 0 : index
    %c0_71 = arith.constant 0 : index
    %218 = vector.load %arg8[%c0_70, %c0_71] : memref<8x8xf32, #tpu.memory_space<vmem>>, vector<8x8xf32>
    tpu.vector_store %arg8[%c0_70, %c0_71], %217 {strides = array<i32>} : memref<8x8xf32, #tpu.memory_space<vmem>>, vector<8x8xf32>,
    return
  }
}

</mosaic_0001>

<bundles_post_ra>
// kernel: tpu_custom_call.1
= control target key start
LH: loop header
LB: loop body
LE: loop exit
PB: predicated region body
PF: predicated region fallthrough
CT: control target
= control target key end

     0   :  { %15 = vsyncpa [#allocation4], 0  ;;  %vm50_vm0 = vcmask 130048   ;;  %v2271_v4 = vmov 0.0|0.0   ;;  %vm2272_vm1 = vmmov 0   ;;  %v2273_v10 = vmov 0.0   ;;  %s2620_s0 = inlined_call_operand.vmem [shape: f32[64,16], index: 0, kind: input, shape index: {}]   ;;  %s2621_s1 = inlined_call_operand.vmem [shape: f32[8,32], index: 1, kind: input, shape index: {}]   ;;  %s2622_s2 = inlined_call_operand.vmem [shape: f32[16,96], index: 2, kind: input, shape index: {}]   ;;  %s2623_s3 = inlined_call_operand.vmem [shape: f32[1,96], index: 3, kind: input, shape index: {}]   ;;  %s2624_s4 = inlined_call_operand.vmem [shape: f32[32,64], index: 4, kind: input, shape index: {}]   ;;  %s2625_s5 = inlined_call_operand.vmem [shape: f32[32,32], index: 5, kind: input, shape index: {}]   ;;  %s2626_s6 = inlined_call_operand.vmem [shape: f32[32,8], index: 6, kind: input, shape index: {}]   ;;  %s2627_s7 = inlined_call_operand.vmem [shape: f32[1,8], index: 7, kind: input, shape index: {}]   ;;  %s2628_s8 = inlined_call_operand.hbm [shape: f32[8,8], index: 8, kind: output, shape index: {0}]   ;;  %s2629_s9 = inlined_call_operand.hbm [shape: f32[8,32], index: 9, kind: output, shape index: {1}]  }
   0x1   :  { %v41_v0 = vld [vmem:[%s2622_s2] sm:$0xff]  ;;  %v42_v1 = vld [vmem:[%s2622_s2 + $0x8] sm:$0xff]  ;;  %2061 = vmatprep.subr.bf16.mxu1 %v2271_v4  ;;  %v191_v8 = vld [vmem:[%s2624_s4 + $0x10] sm:$0xff]  ;;  %1878 = vmatprep.mubr.msk.f32.mxu1 %vm2272_vm1, %v2273_v10  ;;  %s2274_s24 = smov 32  }
   0x2   :  { %v33_v2 = vld [vmem:[%s2620_s0] sm:$0xff]  ;;  %v2057_v3 = vpack.c.bf16 %v42_v1, %v41_v0  ;;  %v190_v6 = vld [vmem:[%s2624_s4 + $0x8] sm:$0xff]  ;;  %v192_v9 = vld [vmem:[%s2624_s4 + $0x18] sm:$0xff] }
   0x3   :  { %1858 = vmatprep.mubr.msk.f32.mxu0 %vm50_vm0, %v33_v2  ;;  %v189_v5 = vld [vmem:[%s2624_s4] sm:$0xff] }
   0x4   :  { %v2346_v7 = vpack.c.bf16 %v190_v6, %v189_v5  ;;  %v2359_v11 = vld [vmem:[%s2621_s1] sm:$0xff]  ;;  %2058 = vmatprep.subr.bf16.mxu0 %v2057_v3 }
   0x5   :  { %280 = vrot.lane.b32.xlu0 %v2359_v11, %s2274_s24 }
   0x6   :  { %16 = vsyncpa [#allocation6], 0  ;;  %2060 = vmatpush3.bf16.msra.mxu0 %v2057_v3  ;;  %v34_v12 = vld [vmem:[%s2620_s0 + $0x8] sm:$0xff]  ;;  %2063 = vmatpush3.bf16.msra.mxu1 %v2346_v7  ;;  %v2367_v13 = vpack.c.bf16 %v192_v9, %v191_v8  ;;  %vm199_vm2 = vcmask 261120   ;;  %v193_v14 = vld [vmem:[%s2625_s5] sm:$0xff]  ;;  %vm180_vm3 = vcmask 785408  }
   0x7   :  { %2064 = vmatprep.subr.bf16.mxu1 %v2271_v4  ;;  %2073 = vmatprep.subr.bf16.mxu0 %v2271_v4  ;;  %v194_v15 = vld [vmem:[%s2625_s5 + $0x8] sm:$0xff]  ;;  %v195_v16 = vld [vmem:[%s2625_s5 + $0x10] sm:$0xff]  ;;  %v196_v18 = vld [vmem:[%s2625_s5 + $0x18] sm:$0xff]  ;;  %s2276_s5 = smov 64   ;;  %vm1683_vm4 = vcmask 64512  }
   0x8   :  { %v2391_v17 = vpack.c.bf16 %v194_v15, %v193_v14  ;;  %v2397_v19 = vpack.c.bf16 %v196_v18, %v195_v16  ;;  %v2405_v20 = vld [vmem:[%s2623_s3] ss:$0 sm:$0xff]  ;;  %s2275_s3 = smov 96   ;;  %v35_v38 = vld [vmem:[%s2620_s0 + $0x10] sm:$0xff]  ;;  %v36_v39 = vld [vmem:[%s2620_s0 + $0x18] sm:$0xff] }
   0x9   :  { %1859 = vmatmul.mubr.msk.f32.vlgmr.msra.gmra.mrb[0].mxu0 %vm50_vm0, %v34_v12  ;;  %v37_v40 = vld [vmem:[%s2620_s0 + $0x20] sm:$0xff]  ;;  %v38_v41 = vld [vmem:[%s2620_s0 + $0x28] sm:$0xff]  ;;  %v39_v42 = vld [vmem:[%s2620_s0 + $0x30] sm:$0xff] }
   0xa   :  { %2066 = vmatpush3.bf16.msra.mxu1 %v2367_v13  ;;  %2075 = vmatpush3.bf16.msra.mxu0 %v2346_v7  ;;  %v40_v43 = vld [vmem:[%s2620_s0 + $0x38] sm:$0xff] }
   0xb   :  { %2067 = vmatprep.subr.bf16.mxu1 %v2271_v4  ;;  %2076 = vmatprep.subr.bf16.mxu0 %v2271_v4 }
   0xc   :  { %1861 = vmatprep.mubr.msk.f32.mxu0 %vm50_vm0, %v35_v38 }
   0xd   :  { %1879 = vmatmul.mubr.msk.f32.vlgmr.msra.gmra.mrb[0].mxu1 %vm199_vm2, %v2359_v11  ;;  %1862 = vmatmul.mubr.msk.f32.gmra.mrb[2].mxu0 %vm50_vm0, %v36_v39 }
   0xe   :  { %1889 = vmatprep.mubr.msk.f32.mxu1 %vm2272_vm1, %v2273_v10  ;;  %2078 = vmatpush3.bf16.msra.mxu0 %v2367_v13 }
   0xf   :  { %2085 = vmatprep.subr.bf16.mxu0 %v2271_v4  ;;  %2069 = vmatpush3.bf16.msra.mxu1 %v2391_v17 }
  0x10   :  { %2070 = vmatprep.subr.bf16.mxu1 %v2271_v4  ;;  %1864 = vmatprep.mubr.msk.f32.mxu0 %vm50_vm0, %v37_v40 }
  0x11   :  { %1865 = vmatmul.mubr.msk.f32.gmra.mrb[4].mxu0 %vm50_vm0, %v38_v41 }
  0x12   :  { %1867 = vmatprep.mubr.msk.f32.mxu0 %vm50_vm0, %v39_v42 }
  0x13   :  { %2072 = vmatpush3.bf16.msra.mxu1 %v2397_v19 }
  0x14   :  { %2079 = vmatprep.subr.bf16.mxu1 %v2271_v4 }
  0x15   :  { %1868 = vmatmul.mubr.msk.f32.gmra.mrb[6].mxu0 %vm50_vm0, %v40_v43 }
  0x16   :  { %1900 = vmatprep.mubr.msk.f32.mxu0 %vm2272_vm1, %v2273_v10 }
  0x77   :  { %v281_v32 = vpop.permute.xlu0 %280 }
  0xdc   :  { %v1860_v21 = vpop.f32.mrb[0].mxu0 }
  0xdd   :  { %v147_v22 = vadd.f32 %v1860_v21, %v2405_v20  ;;  %v141_v23 = vpop.f32.mrb[1].mxu0 }
  0xde   :  { %v142_v24 = vadd.f32 %v2405_v20, %v141_v23 }
  0xdf   :  { %182 = vst.msk [vmem:[#allocation2 + $0x8] sm:$0xff] %vm180_vm3, %v147_v22 }
  0xe0   :  { %181 = vst.msk [vmem:[#allocation2] sm:$0xff] %vm180_vm3, %v142_v24  ;;  %v269_v25 = vpop.f32.mrb[0].mxu1  ;;  %v1863_v47 = vpop.f32.mrb[2].mxu0 }
  0xe1   :  { %v1880_v26 = vpop.f32.mrb[1].mxu1  ;;  %v157_v48 = vadd.f32 %v1863_v47, %v2405_v20  ;;  %v151_v49 = vpop.f32.mrb[3].mxu0 }
  0xe2   :  { %v152_v50 = vadd.f32 %v2405_v20, %v151_v49 }
  0xe3   :  { %184 = vst.msk [vmem:[#allocation2 + $0x18] sm:$0xff] %vm180_vm3, %v157_v48 }
  0xe4   :  { %v1866_v51 = vpop.f32.mrb[4].mxu0  ;;  %183 = vst.msk [vmem:[#allocation2 + $0x10] sm:$0xff] %vm180_vm3, %v152_v50 }
  0xe5   :  { %v167_v52 = vadd.f32 %v1866_v51, %v2405_v20  ;;  %v161_v53 = vpop.f32.mrb[5].mxu0 }
  0xe6   :  { %v162_v54 = vadd.f32 %v2405_v20, %v161_v53  ;;  %v374_v0 = vld [vmem:[#allocation2 + $0x8] sm:$0xff] }
  0xe7   :  { %v198_v27 = vld [vmem:[#allocation2] sm:$0xff]  ;;  %186 = vst.msk [vmem:[#allocation2 + $0x28] sm:$0xff] %vm180_vm3, %v167_v52 }
  0xe8   :  { %v273_v28 = vadd.f32 %v269_v25, %v198_v27  ;;  %v1869_v55 = vpop.f32.mrb[6].mxu0  ;;  %185 = vst.msk [vmem:[#allocation2 + $0x20] sm:$0xff] %vm180_vm3, %v162_v54 }
  0xe9   :  { %v177_v56 = vadd.f32 %v1869_v55, %v2405_v20  ;;  %v171_v57 = vpop.f32.mrb[7].mxu0 }
  0xea   :  { %v1734_v29 = vmul.f32 -1.442695, %v273_v28  ;;  %v172_v58 = vadd.f32 %v2405_v20, %v171_v57  ;;  %v724_v48 = vld [vmem:[#allocation2 + $0x18] sm:$0xff] }
  0xeb   :  { %188 = vst.msk [vmem:[#allocation2 + $0x38] sm:$0xff] %vm180_vm3, %v177_v56 }
  0xec   :  { %2171 = vpow2.f32 %v1734_v29  ;;  %187 = vst.msk [vmem:[#allocation2 + $0x30] sm:$0xff] %vm180_vm3, %v172_v58 }
  0xf6   :  { %v2172_v30 = vpop.eup %2171 }
  0xf7   :  { %v277_v31 = vadd.f32 1.0, %v2172_v30 }
  0xf9   :  { %2173 = vrcp.f32 %v277_v31 }
 0x103   :  { %v2174_v33 = vpop.eup %2173 }
 0x104   :  { %v283_v34 = vmul.f32 %v2174_v33, %v281_v32  ;;  %v366_v59 = vsub.f32 1.0, %v2174_v33  ;;  %v365_v61 = vmul.f32 %v2174_v33, %v2359_v11 }
 0x106   :  { %285 = vrot.lane.b32.xlu0 %v283_v34, %s2275_s3 }
 0x178   :  { %v286_v35 = vpop.permute.xlu0 %285 }
 0x179   :  { %1890 = vmatmul.mubr.msk.f32.vlgmr.msra.gmra.mrb[2].mxu1 %vm199_vm2, %v286_v35 }
 0x17a   :  { %2081 = vmatpush3.bf16.msra.mxu1 %v2391_v17  ;;  %1911 = vmatprep.mubr.msk.f32.mxu1 %vm2272_vm1, %v2273_v10 }
 0x17b   :  { %2082 = vmatprep.subr.bf16.mxu1 %v2271_v4 }
 0x17e   :  { %2084 = vmatpush3.bf16.msra.mxu1 %v2397_v19 }
 0x17f   :  { %2091 = vmatprep.subr.bf16.mxu1 %v2271_v4 }
 0x24c   :  { %v355_v36 = vpop.f32.mrb[2].mxu1 }
 0x24d   :  { %360 = vrot.lane.b32.xlu1 %v355_v36, %s2276_s5  ;;  %v1891_v37 = vpop.f32.mrb[3].mxu1 }
 0x2bf   :  { %v361_v44 = vpop.permute.xlu1 %360 }
 0x2c0   :  { %v363_v45 = vadd.f32 %v361_v44, %v198_v27  ;;  %v549_v27 = vld [vmem:[#allocation2 + $0x10] sm:$0xff] }
 0x2c2   :  { %2175 = vtanh.f32 %v363_v45 }
 0x2cc   :  { %v2176_v46 = vpop.eup %2175 }
 0x2cd   :  { %368 = vrot.lane.b32.xlu1 %v2176_v46, %s2276_s5 }
 0x33f   :  { %v369_v60 = vpop.permute.xlu1 %368 }
 0x340   :  { %v371_v62 = vmul.f32 %v369_v60, %v366_v59 }
 0x342   :  { %v372_v63 = vadd.f32 %v371_v62, %v365_v61 }
 0x344   :  { %455 = vrot.lane.b32.xlu0 %v372_v63, %s2274_s24  ;;  %1901 = vmatmul.mubr.msk.f32.vlgmr.msra.gmra.mrb[8].mxu0 %vm199_vm2, %v372_v63 }
 0x345   :  { %2087 = vmatpush3.bf16.msra.mxu0 %v2346_v7  ;;  %1922 = vmatprep.mubr.msk.f32.mxu0 %vm2272_vm1, %v2273_v10 }
 0x346   :  { %2088 = vmatprep.subr.bf16.mxu0 %v2271_v4 }
 0x349   :  { %2090 = vmatpush3.bf16.msra.mxu0 %v2367_v13 }
 0x34a   :  { %2097 = vmatprep.subr.bf16.mxu0 %v2271_v4 }
 0x3b6   :  { %v456_v11 = vpop.permute.xlu0 %455 }
 0x417   :  { %v444_v1 = vpop.f32.mrb[8].mxu0 }
 0x418   :  { %v448_v2 = vadd.f32 %v444_v1, %v374_v0  ;;  %v1902_v3 = vpop.f32.mrb[9].mxu0 }
 0x41a   :  { %v1737_v5 = vmul.f32 -1.442695, %v448_v2 }
 0x41c   :  { %2177 = vpow2.f32 %v1737_v5 }
 0x426   :  { %v2178_v6 = vpop.eup %2177 }
 0x427   :  { %v452_v8 = vadd.f32 1.0, %v2178_v6  ;;  %v899_v6 = vld [vmem:[#allocation2 + $0x20] sm:$0xff] }
 0x429   :  { %2179 = vrcp.f32 %v452_v8 }
 0x433   :  { %v2180_v9 = vpop.eup %2179 }
 0x434   :  { %v458_v12 = vmul.f32 %v2180_v9, %v456_v11  ;;  %v541_v22 = vsub.f32 1.0, %v2180_v9  ;;  %v540_v24 = vmul.f32 %v2180_v9, %v372_v63 }
 0x436   :  { %460 = vrot.lane.b32.xlu1 %v458_v12, %s2275_s3 }
 0x4a8   :  { %v461_v14 = vpop.permute.xlu1 %460 }
 0x4a9   :  { %1912 = vmatmul.mubr.msk.f32.vlgmr.msra.gmra.mrb[4].mxu1 %vm199_vm2, %v461_v14 }
 0x4aa   :  { %2093 = vmatpush3.bf16.msra.mxu1 %v2391_v17  ;;  %1933 = vmatprep.mubr.msk.f32.mxu1 %vm2272_vm1, %v2273_v10 }
 0x4ab   :  { %2094 = vmatprep.subr.bf16.mxu1 %v2271_v4 }
 0x4ae   :  { %2096 = vmatpush3.bf16.msra.mxu1 %v2397_v19 }
 0x4af   :  { %2103 = vmatprep.subr.bf16.mxu1 %v2271_v4 }
 0x57c   :  { %v530_v15 = vpop.f32.mrb[4].mxu1 }
 0x57d   :  { %535 = vrot.lane.b32.xlu0 %v530_v15, %s2276_s5  ;;  %v1913_v16 = vpop.f32.mrb[5].mxu1 }
 0x5ef   :  { %v536_v18 = vpop.permute.xlu0 %535 }
 0x5f0   :  { %v538_v20 = vadd.f32 %v536_v18, %v374_v0 }
 0x5f2   :  { %2181 = vtanh.f32 %v538_v20 }
 0x5fc   :  { %v2182_v21 = vpop.eup %2181 }
 0x5fd   :  { %543 = vrot.lane.b32.xlu1 %v2182_v21, %s2276_s5 }
 0x66f   :  { %v544_v23 = vpop.permute.xlu1 %543 }
 0x670   :  { %v546_v25 = vmul.f32 %v544_v23, %v541_v22 }
 0x672   :  { %v547_v26 = vadd.f32 %v546_v25, %v540_v24 }
 0x674   :  { %630 = vrot.lane.b32.xlu0 %v547_v26, %s2274_s24  ;;  %1923 = vmatmul.mubr.msk.f32.vlgmr.msra.gmra.mrb[10].mxu0 %vm199_vm2, %v547_v26 }
 0x675   :  { %2099 = vmatpush3.bf16.msra.mxu0 %v2346_v7  ;;  %1944 = vmatprep.mubr.msk.f32.mxu0 %vm2272_vm1, %v2273_v10 }
 0x676   :  { %2100 = vmatprep.subr.bf16.mxu0 %v2271_v4 }
 0x679   :  { %2102 = vmatpush3.bf16.msra.mxu0 %v2367_v13 }
 0x67a   :  { %2109 = vmatprep.subr.bf16.mxu0 %v2271_v4 }
 0x6e6   :  { %v631_v35 = vpop.permute.xlu0 %630 }
 0x747   :  { %v619_v28 = vpop.f32.mrb[10].mxu0 }
 0x748   :  { %v623_v29 = vadd.f32 %v619_v28, %v549_v27  ;;  %v1924_v30 = vpop.f32.mrb[11].mxu0 }
 0x74a   :  { %v1740_v31 = vmul.f32 -1.442695, %v623_v29 }
 0x74c   :  { %2183 = vpow2.f32 %v1740_v31 }
 0x756   :  { %v2184_v32 = vpop.eup %2183 }
 0x757   :  { %v627_v33 = vadd.f32 1.0, %v2184_v32  ;;  %v1074_v32 = vld [vmem:[#allocation2 + $0x28] sm:$0xff] }
 0x759   :  { %2185 = vrcp.f32 %v627_v33 }
 0x763   :  { %v2186_v34 = vpop.eup %2185 }
 0x764   :  { %v633_v36 = vmul.f32 %v2186_v34, %v631_v35  ;;  %v716_v43 = vsub.f32 1.0, %v2186_v34  ;;  %v715_v45 = vmul.f32 %v2186_v34, %v547_v26 }
 0x766   :  { %635 = vrot.lane.b32.xlu1 %v633_v36, %s2275_s3 }
 0x7d8   :  { %v636_v37 = vpop.permute.xlu1 %635 }
 0x7d9   :  { %1934 = vmatmul.mubr.msk.f32.vlgmr.msra.gmra.mrb[6].mxu1 %vm199_vm2, %v636_v37 }
 0x7da   :  { %2105 = vmatpush3.bf16.msra.mxu1 %v2391_v17  ;;  %1955 = vmatprep.mubr.msk.f32.mxu1 %vm2272_vm1, %v2273_v10 }
 0x7db   :  { %2106 = vmatprep.subr.bf16.mxu1 %v2271_v4 }
 0x7de   :  { %2108 = vmatpush3.bf16.msra.mxu1 %v2397_v19 }
 0x7df   :  { %2115 = vmatprep.subr.bf16.mxu1 %v2271_v4 }
 0x8ac   :  { %v705_v38 = vpop.f32.mrb[6].mxu1 }
 0x8ad   :  { %710 = vrot.lane.b32.xlu0 %v705_v38, %s2276_s5  ;;  %v1935_v39 = vpop.f32.mrb[7].mxu1 }
 0x91f   :  { %v711_v40 = vpop.permute.xlu0 %710 }
 0x920   :  { %v713_v41 = vadd.f32 %v711_v40, %v549_v27 }
 0x922   :  { %2187 = vtanh.f32 %v713_v41 }
 0x92c   :  { %v2188_v42 = vpop.eup %2187 }
 0x92d   :  { %718 = vrot.lane.b32.xlu1 %v2188_v42, %s2276_s5 }
 0x99f   :  { %v719_v44 = vpop.permute.xlu1 %718 }
 0x9a0   :  { %v721_v46 = vmul.f32 %v719_v44, %v716_v43 }
 0x9a2   :  { %v722_v47 = vadd.f32 %v721_v46, %v715_v45 }
 0x9a4   :  { %805 = vrot.lane.b32.xlu0 %v722_v47, %s2274_s24  ;;  %1945 = vmatmul.mubr.msk.f32.vlgmr.msra.gmra.mrb[12].mxu0 %vm199_vm2, %v722_v47 }
 0x9a5   :  { %2111 = vmatpush3.bf16.msra.mxu0 %v2346_v7  ;;  %1966 = vmatprep.mubr.msk.f32.mxu0 %vm2272_vm1, %v2273_v10 }
 0x9a6   :  { %2112 = vmatprep.subr.bf16.mxu0 %v2271_v4 }
 0x9a9   :  { %2114 = vmatpush3.bf16.msra.mxu0 %v2367_v13 }
 0x9aa   :  { %2121 = vmatprep.subr.bf16.mxu0 %v2271_v4 }
 0xa16   :  { %v806_v56 = vpop.permute.xlu0 %805 }
 0xa77   :  { %v794_v49 = vpop.f32.mrb[12].mxu0 }
 0xa78   :  { %v798_v50 = vadd.f32 %v794_v49, %v724_v48  ;;  %v1946_v51 = vpop.f32.mrb[13].mxu0 }
 0xa7a   :  { %v1743_v52 = vmul.f32 -1.442695, %v798_v50 }
 0xa7c   :  { %2189 = vpow2.f32 %v1743_v52 }
 0xa86   :  { %v2190_v53 = vpop.eup %2189 }
 0xa87   :  { %v802_v54 = vadd.f32 1.0, %v2190_v53  ;;  %v1249_v53 = vld [vmem:[#allocation2 + $0x30] sm:$0xff] }
 0xa89   :  { %2191 = vrcp.f32 %v802_v54 }
 0xa93   :  { %v2192_v55 = vpop.eup %2191 }
 0xa94   :  { %v808_v57 = vmul.f32 %v2192_v55, %v806_v56  ;;  %v891_v0 = vsub.f32 1.0, %v2192_v55  ;;  %v890_v2 = vmul.f32 %v2192_v55, %v722_v47 }
 0xa96   :  { %810 = vrot.lane.b32.xlu1 %v808_v57, %s2275_s3 }
 0xb08   :  { %v811_v58 = vpop.permute.xlu1 %810 }
 0xb09   :  { %1956 = vmatmul.mubr.msk.f32.vlgmr.msra.gmra.mrb[8].mxu1 %vm199_vm2, %v811_v58 }
 0xb0a   :  { %2117 = vmatpush3.bf16.msra.mxu1 %v2391_v17  ;;  %1977 = vmatprep.mubr.msk.f32.mxu1 %vm2272_vm1, %v2273_v10 }
 0xb0b   :  { %2118 = vmatprep.subr.bf16.mxu1 %v2271_v4 }
 0xb0e   :  { %2120 = vmatpush3.bf16.msra.mxu1 %v2397_v19 }
 0xb0f   :  { %2127 = vmatprep.subr.bf16.mxu1 %v2271_v4 }
 0xbdc   :  { %v880_v59 = vpop.f32.mrb[8].mxu1 }
 0xbdd   :  { %885 = vrot.lane.b32.xlu0 %v880_v59, %s2276_s5  ;;  %v1957_v60 = vpop.f32.mrb[9].mxu1 }
 0xc4f   :  { %v886_v61 = vpop.permute.xlu0 %885 }
 0xc50   :  { %v888_v62 = vadd.f32 %v886_v61, %v724_v48 }
 0xc52   :  { %2193 = vtanh.f32 %v888_v62 }
 0xc5c   :  { %v2194_v63 = vpop.eup %2193 }
 0xc5d   :  { %893 = vrot.lane.b32.xlu1 %v2194_v63, %s2276_s5 }
 0xccf   :  { %v894_v1 = vpop.permute.xlu1 %893 }
 0xcd0   :  { %v896_v3 = vmul.f32 %v894_v1, %v891_v0 }
 0xcd2   :  { %v897_v5 = vadd.f32 %v896_v3, %v890_v2 }
 0xcd4   :  { %980 = vrot.lane.b32.xlu0 %v897_v5, %s2274_s24  ;;  %1967 = vmatmul.mubr.msk.f32.vlgmr.msra.gmra.mrb[14].mxu0 %vm199_vm2, %v897_v5 }
 0xcd5   :  { %2123 = vmatpush3.bf16.msra.mxu0 %v2346_v7  ;;  %1988 = vmatprep.mubr.msk.f32.mxu0 %vm2272_vm1, %v2273_v10 }
 0xcd6   :  { %2124 = vmatprep.subr.bf16.mxu0 %v2271_v4 }
 0xcd9   :  { %2126 = vmatpush3.bf16.msra.mxu0 %v2367_v13 }
 0xcda   :  { %2133 = vmatprep.subr.bf16.mxu0 %v2271_v4 }
 0xd46   :  { %v981_v18 = vpop.permute.xlu0 %980 }
 0xda7   :  { %v969_v8 = vpop.f32.mrb[14].mxu0 }
 0xda8   :  { %v973_v9 = vadd.f32 %v969_v8, %v899_v6  ;;  %v1968_v11 = vpop.f32.mrb[15].mxu0 }
 0xdaa   :  { %v1746_v12 = vmul.f32 -1.442695, %v973_v9 }
 0xdac   :  { %2195 = vpow2.f32 %v1746_v12 }
 0xdb6   :  { %v2196_v14 = vpop.eup %2195 }
 0xdb7   :  { %v977_v15 = vadd.f32 1.0, %v2196_v14 }
 0xdb9   :  { %2197 = vrcp.f32 %v977_v15 }
 0xdc3   :  { %v2198_v16 = vpop.eup %2197 }
 0xdc4   :  { %v983_v20 = vmul.f32 %v2198_v16, %v981_v18  ;;  %v1066_v27 = vsub.f32 1.0, %v2198_v16  ;;  %v1065_v29 = vmul.f32 %v2198_v16, %v897_v5 }
 0xdc6   :  { %985 = vrot.lane.b32.xlu1 %v983_v20, %s2275_s3 }
 0xe38   :  { %v986_v21 = vpop.permute.xlu1 %985 }
 0xe39   :  { %1978 = vmatmul.mubr.msk.f32.vlgmr.msra.gmra.mrb[10].mxu1 %vm199_vm2, %v986_v21 }
 0xe3a   :  { %2129 = vmatpush3.bf16.msra.mxu1 %v2391_v17  ;;  %1999 = vmatprep.mubr.msk.f32.mxu1 %vm2272_vm1, %v2273_v10 }
 0xe3b   :  { %2130 = vmatprep.subr.bf16.mxu1 %v2271_v4 }
 0xe3e   :  { %2132 = vmatpush3.bf16.msra.mxu1 %v2397_v19 }
 0xe3f   :  { %2139 = vmatprep.subr.bf16.mxu1 %v2271_v4 }
 0xf0c   :  { %v1055_v22 = vpop.f32.mrb[10].mxu1 }
 0xf0d   :  { %1060 = vrot.lane.b32.xlu0 %v1055_v22, %s2276_s5  ;;  %v1979_v23 = vpop.f32.mrb[11].mxu1 }
 0xf7f   :  { %v1061_v24 = vpop.permute.xlu0 %1060 }
 0xf80   :  { %v1063_v25 = vadd.f32 %v1061_v24, %v899_v6  ;;  %v1599_v24 = vld [vmem:[%s2626_s6] sm:$0xff] }
 0xf82   :  { %2199 = vtanh.f32 %v1063_v25  ;;  %v1600_v25 = vld [vmem:[%s2626_s6 + $0x8] sm:$0xff] }
 0xf8c   :  { %v2200_v26 = vpop.eup %2199 }
 0xf8d   :  { %1068 = vrot.lane.b32.xlu1 %v2200_v26, %s2276_s5  ;;  %v2158_v26 = vpack.c.bf16 %v1600_v25, %v1599_v24 }
 0xfff   :  { %v1069_v28 = vpop.permute.xlu1 %1068 }
0x1000   :  { %v1071_v30 = vmul.f32 %v1069_v28, %v1066_v27  ;;  %v1601_v27 = vld [vmem:[%s2626_s6 + $0x10] sm:$0xff]  ;;  %v1602_v28 = vld [vmem:[%s2626_s6 + $0x18] sm:$0xff]  ;;  %s2277_s6 = smov [#allocation5]  }
0x1001   :  { %s1712_s11 = sshll.u32 %s2277_s6, 4  ;;  %s1713_s11 = int_to_ptr.vmem [resolvable:$true] %s1712_s11 }
0x1002   :  { %v1072_v31 = vadd.f32 %v1071_v30, %v1065_v29  ;;  %v2161_v30 = vpack.c.bf16 %v1602_v28, %v1601_v27  ;;  %s2223_s12 = scalar_lea.vmem %s1713_s11, 128  ;;  %p2228_p1 = scmp.lt.s32.totalorder %s1713_s11, %s1713_s11 }
0x1003   :  { %p2224_p0 = scmp.ne.s32.totalorder %s1713_s11, %s2223_s12  ;;  %p2229_p2 = scmp.lt.s32.totalorder %s2223_s12, %s2223_s12 }
0x1004   :  { %1155 = vrot.lane.b32.xlu0 %v1072_v31, %s2274_s24  ;;  %1989 = vmatmul.mubr.msk.f32.vlgmr.msra.gmra.mrb[16].mxu0 %vm199_vm2, %v1072_v31 }
0x1005   :  { %2135 = vmatpush3.bf16.msra.mxu0 %v2346_v7  ;;  %2010 = vmatprep.mubr.msk.f32.mxu0 %vm2272_vm1, %v2273_v10  ;;  %p2230_p3 = por %p2229_p2, %p2228_p1 }
0x1006   :  { %2136 = vmatprep.subr.bf16.mxu0 %v2271_v4 }
0x1007   :  { %p2231_p4 = pnand %p2230_p3, %p2224_p0 }
0x1009   :  { %2138 = vmatpush3.bf16.msra.mxu0 %v2367_v13 }
0x100a   :  { %2145 = vmatprep.subr.bf16.mxu0 %v2271_v4 }
0x1076   :  { %v1156_v40 = vpop.permute.xlu0 %1155 }
0x10d7   :  { %v1144_v33 = vpop.f32.mrb[16].mxu0 }
0x10d8   :  { %v1148_v34 = vadd.f32 %v1144_v33, %v1074_v32  ;;  %v1990_v35 = vpop.f32.mrb[17].mxu0 }
0x10da   :  { %v1749_v36 = vmul.f32 -1.442695, %v1148_v34 }
0x10dc   :  { %2201 = vpow2.f32 %v1749_v36 }
0x10e6   :  { %v2202_v37 = vpop.eup %2201 }
0x10e7   :  { %v1152_v38 = vadd.f32 1.0, %v2202_v37  ;;  %v1757_v37 = vld [vmem:[%s2627_s7] ss:$0 sm:$0xff] }
0x10e9   :  { %2203 = vrcp.f32 %v1152_v38 }
0x10f3   :  { %v2204_v39 = vpop.eup %2203 }
0x10f4   :  { %v1158_v41 = vmul.f32 %v2204_v39, %v1156_v40  ;;  %v1241_v48 = vsub.f32 1.0, %v2204_v39  ;;  %v1240_v50 = vmul.f32 %v2204_v39, %v1072_v31 }
0x10f6   :  { %1160 = vrot.lane.b32.xlu1 %v1158_v41, %s2275_s3 }
0x1168   :  { %v1161_v42 = vpop.permute.xlu1 %1160 }
0x1169   :  { %2000 = vmatmul.mubr.msk.f32.vlgmr.msra.gmra.mrb[12].mxu1 %vm199_vm2, %v1161_v42 }
0x116a   :  { %2141 = vmatpush3.bf16.msra.mxu1 %v2391_v17  ;;  %2021 = vmatprep.mubr.msk.f32.mxu1 %vm2272_vm1, %v2273_v10 }
0x116b   :  { %2142 = vmatprep.subr.bf16.mxu1 %v2271_v4 }
0x116e   :  { %2144 = vmatpush3.bf16.msra.mxu1 %v2397_v19 }
0x116f   :  { %2151 = vmatprep.subr.bf16.mxu1 %v2271_v4 }
0x123c   :  { %v1230_v43 = vpop.f32.mrb[12].mxu1 }
0x123d   :  { %1235 = vrot.lane.b32.xlu0 %v1230_v43, %s2276_s5  ;;  %v2001_v44 = vpop.f32.mrb[13].mxu1 }
0x12af   :  { %v1236_v45 = vpop.permute.xlu0 %1235 }
0x12b0   :  { %v1238_v46 = vadd.f32 %v1236_v45, %v1074_v32 }
0x12b2   :  { %2205 = vtanh.f32 %v1238_v46 }
0x12bc   :  { %v2206_v47 = vpop.eup %2205 }
0x12bd   :  { %1243 = vrot.lane.b32.xlu1 %v2206_v47, %s2276_s5 }
0x132f   :  { %v1244_v49 = vpop.permute.xlu1 %1243 }
0x1330   :  { %v1246_v51 = vmul.f32 %v1244_v49, %v1241_v48 }
0x1332   :  { %v1247_v52 = vadd.f32 %v1246_v51, %v1240_v50 }
0x1334   :  { %1330 = vrot.lane.b32.xlu0 %v1247_v52, %s2274_s24  ;;  %2011 = vmatmul.mubr.msk.f32.vlgmr.msra.gmra.mrb[18].mxu0 %vm199_vm2, %v1247_v52 }
0x1335   :  { %2147 = vmatpush3.bf16.msra.mxu0 %v2346_v7  ;;  %2032 = vmatprep.mubr.msk.f32.mxu0 %vm2272_vm1, %v2273_v10 }
0x1336   :  { %2148 = vmatprep.subr.bf16.mxu0 %v2271_v4 }
0x1339   :  { %2150 = vmatpush3.bf16.msra.mxu0 %v2367_v13 }
0x133a   :  { %2157 = vmatprep.subr.bf16.mxu0 %v2271_v4 }
0x13a6   :  { %v1331_v7 = vpop.permute.xlu0 %1330 }
0x1407   :  { %v1319_v54 = vpop.f32.mrb[18].mxu0 }
0x1408   :  { %v1323_v55 = vadd.f32 %v1319_v54, %v1249_v53  ;;  %v2012_v56 = vpop.f32.mrb[19].mxu0 }
0x140a   :  { %v1752_v57 = vmul.f32 -1.442695, %v1323_v55 }
0x140c   :  { %2207 = vpow2.f32 %v1752_v57 }
0x1416   :  { %v2208_v58 = vpop.eup %2207 }
0x1417   :  { %v1327_v59 = vadd.f32 1.0, %v2208_v58 }
0x1419   :  { %2209 = vrcp.f32 %v1327_v59 }
0x1423   :  { %v2210_v60 = vpop.eup %2209 }
0x1424   :  { %v1333_v61 = vmul.f32 %v2210_v60, %v1331_v7  ;;  %v1416_v3 = vsub.f32 1.0, %v2210_v60 }
0x1426   :  { %1335 = vrot.lane.b32.xlu1 %v1333_v61, %s2275_s3 }
0x1498   :  { %v1336_v62 = vpop.permute.xlu1 %1335 }
0x1499   :  { %2022 = vmatmul.mubr.msk.f32.vlgmr.msra.gmra.mrb[14].mxu1 %vm199_vm2, %v1336_v62 }
0x149a   :  { %2153 = vmatpush3.bf16.msra.mxu1 %v2391_v17  ;;  %2043 = vmatprep.mubr.msk.f32.mxu1 %vm2272_vm1, %v2273_v10  ;;  %v1415_v17 = vmul.f32 %v2210_v60, %v1247_v52 }
0x149b   :  { %2154 = vmatprep.subr.bf16.mxu1 %v2271_v4 }
0x149e   :  { %2156 = vmatpush3.bf16.msra.mxu1 %v2397_v19  ;;  %v1424_v19 = vld [vmem:[#allocation2 + $0x38] sm:$0xff] }
0x156c   :  { %v1405_v13 = vpop.f32.mrb[14].mxu1 }
0x156d   :  { %1410 = vrot.lane.b32.xlu0 %v1405_v13, %s2276_s5  ;;  %v2023_v63 = vpop.f32.mrb[15].mxu1 }
0x15df   :  { %v1411_v0 = vpop.permute.xlu0 %1410 }
0x15e0   :  { %v1413_v1 = vadd.f32 %v1411_v0, %v1249_v53 }
0x15e2   :  { %2211 = vtanh.f32 %v1413_v1 }
0x15ec   :  { %v2212_v2 = vpop.eup %2211 }
0x15ed   :  { %1418 = vrot.lane.b32.xlu1 %v2212_v2, %s2276_s5 }
0x165f   :  { %v1419_v5 = vpop.permute.xlu1 %1418 }
0x1660   :  { %v1421_v6 = vmul.f32 %v1419_v5, %v1416_v3 }
0x1662   :  { %v1422_v8 = vadd.f32 %v1421_v6, %v1415_v17 }
0x1664   :  { %1505 = vrot.lane.b32.xlu0 %v1422_v8, %s2274_s24  ;;  %2033 = vmatmul.mubr.msk.f32.vlgmr.msra.gmra.mrb[20].mxu0 %vm199_vm2, %v1422_v8 }
0x1665   :  { %2054 = vmatprep.mubr.msk.f32.mxu0 %vm2272_vm1, %v2273_v10  ;;  %2159 = vmatpush3.bf16.msra.mxu0 %v2158_v26 }
0x1666   :  { %2160 = vmatprep.subr.bf16.mxu0 %v2271_v4 }
0x1669   :  { %2162 = vmatpush3.bf16.msra.mxu0 %v2161_v30 }
0x16d6   :  { %v1506_v20 = vpop.permute.xlu0 %1505 }
0x1737   :  { %v1494_v9 = vpop.f32.mrb[20].mxu0 }
0x1738   :  { %v1498_v11 = vadd.f32 %v1494_v9, %v1424_v19  ;;  %v2034_v12 = vpop.f32.mrb[21].mxu0 }
0x173a   :  { %v1755_v14 = vmul.f32 -1.442695, %v1498_v11 }
0x173c   :  { %2213 = vpow2.f32 %v1755_v14 }
0x1746   :  { %v2214_v15 = vpop.eup %2213 }
0x1747   :  { %v1502_v16 = vadd.f32 1.0, %v2214_v15 }
0x1749   :  { %2215 = vrcp.f32 %v1502_v16 }
0x1753   :  { %v2216_v18 = vpop.eup %2215 }
0x1754   :  { %v1508_v21 = vmul.f32 %v2216_v18, %v1506_v20  ;;  %v1591_v33 = vsub.f32 1.0, %v2216_v18  ;;  %v1590_v35 = vmul.f32 %v2216_v18, %v1422_v8 }
0x1756   :  { %1510 = vrot.lane.b32.xlu1 %v1508_v21, %s2275_s3 }
0x17c8   :  { %v1511_v22 = vpop.permute.xlu1 %1510 }
0x17c9   :  { %2044 = vmatmul.mubr.msk.f32.vlgmr.msra.gmra.mrb[16].mxu1 %vm199_vm2, %v1511_v22 }
0x189c   :  { %v1580_v23 = vpop.f32.mrb[16].mxu1 }
0x189d   :  { %1585 = vrot.lane.b32.xlu0 %v1580_v23, %s2276_s5  ;;  %v2045_v10 = vpop.f32.mrb[17].mxu1 }
0x190f   :  { %v1586_v29 = vpop.permute.xlu0 %1585 }
0x1910   :  { %v1588_v31 = vadd.f32 %v1586_v29, %v1424_v19 }
0x1912   :  { %2217 = vtanh.f32 %v1588_v31 }
0x191c   :  { %v2218_v32 = vpop.eup %2217 }
0x191d   :  { %1593 = vrot.lane.b32.xlu1 %v2218_v32, %s2276_s5 }
0x198f   :  { %v1594_v34 = vpop.permute.xlu1 %1593 }
0x1990   :  { %v1596_v4 = vmul.f32 %v1594_v34, %v1591_v33 }
0x1992   :  { %v1597_v36 = vadd.f32 %v1596_v4, %v1590_v35 }
0x1994   :  { %1598 = vst.msk [vmem:[#allocation5] sm:$0xff] %vm199_vm2, %v1597_v36  ;;  %2055 = vmatmul.mubr.msk.f32.vlgmr.msra.gmra.mrb[22].mxu0 %vm199_vm2, %v1597_v36 }
0x1a67   :  { %v1679_v38 = vpop.f32.mrb[22].mxu0 }
0x1a68   :  { %v1680_v39 = vadd.f32 %v1757_v37, %v1679_v38  ;;  %v2056_v40 = vpop.f32.mrb[23].mxu0 }
0x1a6a   :  { %v1684_v41 = vsel %vm1683_vm4, %v1680_v39, -inf }
0x1a6b   :  { %1685 = vmax.xlane.f32.xlu0 %v1684_v41 }
0x1af8   :  { %v1686_v42 = vpop.xlane.xlu0 %1685 }
0x1af9   :  { %v1687_v43 = vsub.f32 %v1680_v39, %v1686_v42 }
0x1afb   :  { %v1688_v44 = vmul.f32 1.442695, %v1687_v43 }
0x1afd   :  { %2219 = vpow2.f32 %v1688_v44 }
0x1b07   :  { %v2220_v45 = vpop.eup %2219 }
0x1b08   :  { %v1690_v46 = vsel %vm1683_vm4, %v2220_v45, 0.0 }
0x1b09   :  { %1691 = vadd.xlane.f32.xlu1 %v1690_v46 }
0x1b0a   :  { %2234 = shalt.err (!%p2231_p4)
}
0x1b0b   :  { %s2235_s3 = scalar_lea.hbm %s2629_s9, 128 }
0x1b0c   :  { %p2236_p5 = scmp.ne.s32.totalorder %s2629_s9, %s2235_s3  ;;  %p2239_p6 = scmp.lt.u32.totalorder %s2235_s3, %s2629_s9 }
0x1b0e   :  { %p2241_p7 = pnand %p2239_p6, %p2236_p5 }
0x1b10   :  { %2244 = shalt.err (!%p2241_p7)
}
0x1b11   :  { %1715 = dma.vmem_to_hbm [thread:$0]  %s1713_s11, 128, %s2629_s9, [#allocation6]  }
0x1b12   :  { %s2278_s2 = smov [#allocation3]  }
0x1b13   :  { %s1702_s19 = sshll.u32 %s2278_s2, 4  ;;  %s1703_s19 = int_to_ptr.vmem [resolvable:$true] %s1702_s19 }
0x1b14   :  { %s2245_s20 = scalar_lea.vmem %s1703_s19, 128  ;;  %p2250_p9 = scmp.lt.s32.totalorder %s1703_s19, %s1703_s19 }
0x1b15   :  { %p2246_p8 = scmp.ne.s32.totalorder %s1703_s19, %s2245_s20  ;;  %p2251_p10 = scmp.lt.s32.totalorder %s2245_s20, %s2245_s20 }
0x1b17   :  { %p2252_p11 = por %p2251_p10, %p2250_p9 }
0x1b19   :  { %p2253_p12 = pnand %p2252_p11, %p2246_p8 }
0x1b96   :  { %v1692_v47 = vpop.xlane.xlu1 %1691 }
0x1b97   :  { %2221 = vrcp.f32 %v1692_v47 }
0x1ba1   :  { %v2222_v48 = vpop.eup %2221 }
0x1ba2   :  { %v1694_v49 = vmul.f32 %v2222_v48, %v2220_v45 }
0x1ba4   :  { %1695 = vst.msk [vmem:[#allocation3] sm:$0xff] %vm1683_vm4, %v1694_v49 }
0x1ba5   :  { %2256 = shalt.err (!%p2253_p12)
}
0x1ba6   :  { %s2257_s9 = scalar_lea.hbm %s2628_s8, 128 }
0x1ba7   :  { %p2258_p13 = scmp.ne.s32.totalorder %s2628_s8, %s2257_s9  ;;  %p2261_p0 = scmp.lt.u32.totalorder %s2257_s9, %s2628_s8 }
0x1ba9   :  { %p2263_p1 = pnand %p2261_p0, %p2258_p13 }
0x1bab   :  { %2266 = shalt.err (!%p2263_p1)
}
0x1bac   :  { %1705 = dma.vmem_to_hbm [thread:$0]  %s1703_s19, 128, %s2628_s8, [#allocation4]  }
0x1bad   :  { %2267 = dma.done.wait [#allocation4], 128  }
0x1bae   :  { %2268 = vsyncadd [#allocation4], 4294967168 }
0x1baf   :  { %2269 = dma.done.wait [#allocation6], 128  }
0x1bb0   :  { %2270 = vsyncadd [#allocation6], 4294967168 }
0x1bb1   :  { %1722 = vsyncpa [#allocation4], 1 }
0x1bb2   :  { %1723 = vsyncpa [#allocation6], 1 }

</bundles_post_ra>
